<compile_context>
chip_gen: v7x
topology: tpu7x:2x2x1
jax: 0.10.0
libtpu: 0.0.40
codegen_flags: <defaults>
</compile_context>

<pallas_src>
import functools

import jax
import jax.numpy as jnp
from jax.experimental import pallas as pl
from jax.experimental.pallas import tpu as pltpu


def _round_up(x, m):
    return ((x + m - 1) // m) * m


def _critic_fc_kernel(
    s_ref,    # (TB, S)        bf16 state tile
    a_ref,    # (TB, A)        bf16 action tile
    w1_ref,   # (S+A, 2*FC1)   bf16 layer-1 weights, rows [0:S] state, [S:] action
    b_ref,    # (3, W)         f32 biases: row0=b1 (2*FC1), row1=b2 (2*FC2), row2=b3 (2)
    w2_ref,   # (2*FC1, 2*FC2) bf16 block-diagonal
    w3_ref,   # (2*FC2, 2)     bf16 block-diagonal
    q_ref,    # (TB, 2)        f32 output, col 0 = q1, col 1 = q2
    *,
    S, fc1, fc2,
):
    w1 = w1_ref[...]                      # (S+A, 2*FC1) bf16, tiny

    # Layer 1: implicit concat of (state, action); both critics at once.
    h = jnp.dot(s_ref[...], w1[:S, :], preferred_element_type=jnp.float32)
    h = h + jnp.dot(a_ref[...], w1[S:, :], preferred_element_type=jnp.float32)
    h = h + b_ref[0:1, : 2 * fc1]
    h = jnp.maximum(h, 0.0)

    # Layer 2: block-diagonal so the critics stay independent.
    h = jnp.dot(h.astype(jnp.bfloat16), w2_ref[...],
                preferred_element_type=jnp.float32)
    h = h + b_ref[1:2, : 2 * fc2]
    h = jnp.maximum(h, 0.0)

    # Layer 3 -> (TB, 2): column 0 = q1, column 1 = q2.
    q_ref[...] = (
        jnp.dot(h.astype(jnp.bfloat16), w3_ref[...],
                preferred_element_type=jnp.float32)
        + b_ref[2:3, :2]
    )


def pack_critic_fc_params(params, state_size):
    """Pack per-critic (in, out)-layout f32 params into the fused kernel layout.

    Weights go to bf16 (matmul inputs); biases stay f32 and are stacked into a
    single lane-padded (3, W) array. Call once, outside the hot path.
    """
    fc1 = params["w1a"].shape[1]
    fc2 = params["w2a"].shape[1]
    lane_w = max(2 * fc1, 2 * fc2, 2)

    # Layer 1: lane-concat the two critics -> (S+A, 2*FC1).
    w1 = jnp.concatenate([params["w1a"], params["w1b"]], axis=1)

    # Layer 2: exact block-diagonal (zero cross-blocks -> no critic leakage).
    # NOTE: at FC1/FC2 <= MXU tile width the zero FLOPs are free; if the MLP is
    # scaled to >=128 (v5e) / >=256 (v6e/v7x), split critics onto a grid axis
    # instead of block-diag to avoid a 2x FLOP blow-up.
    zero12 = jnp.zeros((fc1, fc2), jnp.float32)
    w2 = jnp.concatenate(
        [
            jnp.concatenate([params["w2a"], zero12], axis=1),
            jnp.concatenate([zero12, params["w2b"]], axis=1),
        ],
        axis=0,
    )                                                       # (2*FC1, 2*FC2)

    # Layer 3: block-diagonal (fc2,1) blocks -> (2*FC2, 2).
    zero31 = jnp.zeros((fc2, 1), jnp.float32)
    w3 = jnp.concatenate(
        [
            jnp.concatenate([params["w3a"], zero31], axis=1),
            jnp.concatenate([zero31, params["w3b"]], axis=1),
        ],
        axis=0,
    )                                                       # (2*FC2, 2)

    def pad_row(b):
        return jnp.pad(b, ((0, 0), (0, lane_w - b.shape[1])))

    b1 = pad_row(jnp.concatenate([params["b1a"], params["b1b"]], axis=1))
    b2 = pad_row(jnp.concatenate([params["b2a"], params["b2b"]], axis=1))
    b3 = pad_row(jnp.concatenate([params["b3a"], params["b3b"]], axis=1))
    biases = jnp.concatenate([b1, b2, b3], axis=0).astype(jnp.float32)  # (3, W)

    return {
        "w1": w1.astype(jnp.bfloat16),
        "w2": w2.astype(jnp.bfloat16),
        "w3": w3.astype(jnp.bfloat16),
        "biases": biases,
    }


@functools.partial(jax.jit, static_argnames=("block_b",))
def critic_fc_fused(state, action, packed, *, block_b=4096):
    """Fused Pallas forward of CriticFC. Returns q of shape (B, 2) f32."""
    state = state.astype(jnp.bfloat16)    # matmul inputs in bf16
    action = action.astype(jnp.bfloat16)
    B, S = state.shape
    A = action.shape[1]

    w1 = packed["w1"]
    w2 = packed["w2"]
    w3 = packed["w3"]
    biases = packed["biases"]
    fc1 = w2.shape[0] // 2
    fc2 = w2.shape[1] // 2

    # Batch tile: full batch when small; otherwise stream with an EVEN number
    # of grid steps so the "parallel" axis shards across both v7x TensorCores.
    if B <= block_b:
        tb = B
        grid = (1,)
    else:
        n_tiles = -(-B // block_b)
        n_tiles += n_tiles % 2                 # make even (v7x 2-TC sharding)
        tb = _round_up(-(-B // n_tiles), 8)    # sublane-aligned tile
        grid = (pl.cdiv(B, tb),)

    kernel = functools.partial(_critic_fc_kernel, S=S, fc1=fc1, fc2=fc2)

    batch_map = lambda i: (i, 0)
    const_map = lambda i: (0, 0)   # weights/biases stay VMEM-resident (no re-fetch)

    q = pl.pallas_call(
        kernel,
        out_shape=jax.ShapeDtypeStruct((B, 2), jnp.float32),
        grid=grid,
        in_specs=[
            pl.BlockSpec((tb, S), batch_map),
            pl.BlockSpec((tb, A), batch_map),
            pl.BlockSpec(w1.shape, const_map),
            pl.BlockSpec(biases.shape, const_map),
            pl.BlockSpec(w2.shape, const_map),
            pl.BlockSpec(w3.shape, const_map),
        ],
        out_specs=pl.BlockSpec((tb, 2), batch_map),
        compiler_params=pltpu.CompilerParams(
            dimension_semantics=("parallel",),
        ),
    )(state, action, w1, biases, w2, w3)

    return q


def critic_fc_forward(state, action, packed, *, block_b=4096):
    """Module-compatible forward: returns (q1, q2), each (B, 1) f32.

    Prefer consuming the fused (B, 2) array from critic_fc_fused directly when
    possible; the split here adds two tiny slice ops.
    """
    q = critic_fc_fused(state, action, packed, block_b=block_b)
    return q[:, 0:1], q[:, 1:2]


def init_critic_fc_params(key, state_size, action_size, fc1_units, fc2_units):
    """Deterministic synthetic init matching CriticFC parameter shapes.

    Weights are stored transposed, i.e. (in, out), so the kernel can do x @ W.
    hidden_init uses fan_in = weight.shape[0] (= out_features in PyTorch layout).
    """
    d_in = state_size + action_size
    keys = jax.random.split(key, 12)

    def uni(k, shape, lim):
        return jax.random.uniform(k, shape, jnp.float32, minval=-lim, maxval=lim)

    lim1 = 1.0 / jnp.sqrt(fc1_units)   # hidden_init of fc1 (weight.size()[0] == fc1_units)
    lim2 = 1.0 / jnp.sqrt(fc2_units)   # hidden_init of fc2
    lim3 = 0.003                       # fc3 uniform(-3e-3, 3e-3)
    # biases keep PyTorch's default Linear bias init range: 1/sqrt(in_features)
    blim1 = 1.0 / jnp.sqrt(d_in)
    blim2 = 1.0 / jnp.sqrt(fc1_units)
    blim3 = 1.0 / jnp.sqrt(fc2_units)

    return {
        # critic 1
        "w1a": uni(keys[0], (d_in, fc1_units), lim1),
        "b1a": uni(keys[1], (1, fc1_units), blim1),
        "w2a": uni(keys[2], (fc1_units, fc2_units), lim2),
        "b2a": uni(keys[3], (1, fc2_units), blim2),
        "w3a": uni(keys[4], (fc2_units, 1), lim3),
        "b3a": uni(keys[5], (1, 1), blim3),
        # critic 2
        "w1b": uni(keys[6], (d_in, fc1_units), lim1),
        "b1b": uni(keys[7], (1, fc1_units), blim1),
        "w2b": uni(keys[8], (fc1_units, fc2_units), lim2),
        "b2b": uni(keys[9], (1, fc2_units), blim2),
        "w3b": uni(keys[10], (fc2_units, 1), lim3),
        "b3b": uni(keys[11], (1, 1), blim3),
    }


def _reference_forward(state, action, params):
    """Plain-JAX f32 reference (unfused twin critics) for correctness checking."""
    sa = jnp.concatenate([state, action], axis=1).astype(jnp.float32)
    h1 = jax.nn.relu(sa @ params["w1a"] + params["b1a"])
    h1 = jax.nn.relu(h1 @ params["w2a"] + params["b2a"])
    q1 = h1 @ params["w3a"] + params["b3a"]
    h2 = jax.nn.relu(sa @ params["w1b"] + params["b1b"])
    h2 = jax.nn.relu(h2 @ params["w2b"] + params["b2b"])
    q2 = h2 @ params["w3b"] + params["b3b"]
    return q1, q2


if __name__ == "__main__":
    # Small shapes consistent with the module's forward.
    B, STATE, ACTION, FC1, FC2 = 8, 24, 8, 64, 32

    key = jax.random.PRNGKey(0)
    k_state, k_action, k_params = jax.random.split(key, 3)

    state = jax.random.normal(k_state, (B, STATE), jnp.float32)
    action = jax.random.normal(k_action, (B, ACTION), jnp.float32)
    params = init_critic_fc_params(k_params, STATE, ACTION, FC1, FC2)

    # Pack once (outside the hot path).
    packed = jax.tree_util.tree_map(
        jax.block_until_ready, pack_critic_fc_params(params, STATE)
    )

    # --- small-B (latency) path: single grid point -------------------------
    q1, q2 = critic_fc_forward(state, action, packed)
    jax.block_until_ready((q1, q2))

    r1, r2 = _reference_forward(state, action, params)
    assert q1.shape == (B, 1) and q2.shape == (B, 1)
    # bf16 matmul inputs => relaxed tolerance vs. the f32 reference.
    assert jnp.allclose(q1, r1, atol=5e-3, rtol=5e-2)
    assert jnp.allclose(q2, r2, atol=5e-3, rtol=5e-2)

    # --- streaming path: multi-tile grid, non-divisible batch (tail tile) ---
    BL = 2000
    state_l = jax.random.normal(jax.random.PRNGKey(1), (BL, STATE), jnp.float32)
    action_l = jax.random.normal(jax.random.PRNGKey(2), (BL, ACTION), jnp.float32)
    q_l = critic_fc_fused(state_l, action_l, packed, block_b=512)
    jax.block_until_ready(q_l)
    r1_l, r2_l = _reference_forward(state_l, action_l, params)
    assert q_l.shape == (BL, 2)
    assert jnp.allclose(q_l[:, 0:1], r1_l, atol=5e-3, rtol=5e-2)
    assert jnp.allclose(q_l[:, 1:2], r2_l, atol=5e-3, rtol=5e-2)

    print("KERNEL_OK")
</pallas_src>

<mosaic_0001>
module attributes {stable_mosaic.version = 11 : i64} {
  func.func @_critic_fc_kernel(%arg0: i32, %arg1: memref<8x24xbf16, #tpu.memory_space<vmem>>, %arg2: memref<8x8xbf16, #tpu.memory_space<vmem>>, %arg3: memref<32x128xbf16, #tpu.memory_space<vmem>>, %arg4: memref<3x128xf32, #tpu.memory_space<vmem>>, %arg5: memref<128x64xbf16, #tpu.memory_space<vmem>>, %arg6: memref<64x2xbf16, #tpu.memory_space<vmem>>, %arg7: memref<8x2xf32, #tpu.memory_space<vmem>>) attributes {dimension_semantics = [#tpu.dimension_semantics<parallel>], iteration_bounds = array<i64: 1>, scalar_prefetch = 0 : i64, scratch_operands = 0 : i64, tpu.core_type = #tpu.core_type<tc>, window_params = [{transform_indices = @transform_0, window_bounds = array<i64: 8, 24>}, {transform_indices = @transform_1, window_bounds = array<i64: 8, 8>}, {pipeline_mode = #tpu.pipeline_mode<synchronous>, transform_indices = @transform_2, window_bounds = array<i64: 32, 128>}, {pipeline_mode = #tpu.pipeline_mode<synchronous>, transform_indices = @transform_3, window_bounds = array<i64: 3, 128>}, {pipeline_mode = #tpu.pipeline_mode<synchronous>, transform_indices = @transform_4, window_bounds = array<i64: 128, 64>}, {pipeline_mode = #tpu.pipeline_mode<synchronous>, transform_indices = @transform_5, window_bounds = array<i64: 64, 2>}, {transform_indices = @transform_6, window_bounds = array<i64: 8, 2>}]} {
    %c0 = arith.constant 0 : index
    %c0_0 = arith.constant 0 : index
    %0 = vector.load %arg3[%c0, %c0_0] : memref<32x128xbf16, #tpu.memory_space<vmem>>, vector<32x128xbf16>
    %c0_1 = arith.constant 0 : index
    %c0_2 = arith.constant 0 : index
    %1 = vector.load %arg1[%c0_1, %c0_2] : memref<8x24xbf16, #tpu.memory_space<vmem>>, vector<8x24xbf16>
    %2 = vector.extract_strided_slice %0 {offsets = [0, 0], sizes = [24, 128], strides = [1, 1]} : vector<32x128xbf16> to vector<24x128xbf16>
    %cst = arith.constant dense<0.000000e+00> : vector<8x128xf32>
    %3 = tpu.matmul %1, %2, %cst {dimension_numbers = #tpu.dot_dimension_numbers<[1], [0], [0], [1], [0, 0, 1, 1], [], []>} : vector<8x24xbf16>, vector<24x128xbf16>, vector<8x128xf32> -> vector<8x128xf32>
    %c0_3 = arith.constant 0 : index
    %c0_4 = arith.constant 0 : index
    %4 = vector.load %arg2[%c0_3, %c0_4] : memref<8x8xbf16, #tpu.memory_space<vmem>>, vector<8x8xbf16>
    %5 = vector.extract_strided_slice %0 {offsets = [24, 0], sizes = [8, 128], strides = [1, 1]} : vector<32x128xbf16> to vector<8x128xbf16>
    %cst_5 = arith.constant dense<0.000000e+00> : vector<8x128xf32>
    %6 = tpu.matmul %4, %5, %cst_5 {dimension_numbers = #tpu.dot_dimension_numbers<[1], [0], [0], [1], [0, 0, 1, 1], [], []>} : vector<8x8xbf16>, vector<8x128xbf16>, vector<8x128xf32> -> vector<8x128xf32>
    %7 = arith.addf %3, %6 : vector<8x128xf32>
    %c0_6 = arith.constant 0 : index
    %c0_7 = arith.constant 0 : index
    %8 = vector.load %arg4[%c0_6, %c0_7] : memref<3x128xf32, #tpu.memory_space<vmem>>, vector<1x128xf32>
    %9 = vector.broadcast %8 : vector<1x128xf32> to vector<8x128xf32>
    %10 = arith.addf %7, %9 : vector<8x128xf32>
    %cst_8 = arith.constant 0.000000e+00 : f32
    %11 = vector.broadcast %cst_8 : f32 to vector<8x128xf32>
    %12 = arith.maximumf %10, %11 : vector<8x128xf32>
    %13 = arith.truncf %12 : vector<8x128xf32> to vector<8x128xbf16>
    %c0_9 = arith.constant 0 : index
    %c0_10 = arith.constant 0 : index
    %14 = vector.load %arg5[%c0_9, %c0_10] : memref<128x64xbf16, #tpu.memory_space<vmem>>, vector<128x64xbf16>
    %cst_11 = arith.constant dense<0.000000e+00> : vector<8x64xf32>
    %15 = tpu.matmul %13, %14, %cst_11 {dimension_numbers = #tpu.dot_dimension_numbers<[1], [0], [0], [1], [0, 0, 1, 1], [], []>} : vector<8x128xbf16>, vector<128x64xbf16>, vector<8x64xf32> -> vector<8x64xf32>
    %c1 = arith.constant 1 : index
    %c0_12 = arith.constant 0 : index
    %16 = vector.load %arg4[%c1, %c0_12] : memref<3x128xf32, #tpu.memory_space<vmem>>, vector<1x64xf32>
    %17 = vector.broadcast %16 : vector<1x64xf32> to vector<8x64xf32>
    %18 = arith.addf %15, %17 : vector<8x64xf32>
    %cst_13 = arith.constant 0.000000e+00 : f32
    %19 = vector.broadcast %cst_13 : f32 to vector<8x64xf32>
    %20 = arith.maximumf %18, %19 : vector<8x64xf32>
    %21 = arith.truncf %20 : vector<8x64xf32> to vector<8x64xbf16>
    %c0_14 = arith.constant 0 : index
    %c0_15 = arith.constant 0 : index
    %22 = vector.load %arg6[%c0_14, %c0_15] : memref<64x2xbf16, #tpu.memory_space<vmem>>, vector<64x2xbf16>
    %cst_16 = arith.constant dense<0.000000e+00> : vector<8x2xf32>
    %23 = tpu.matmul %21, %22, %cst_16 {dimension_numbers = #tpu.dot_dimension_numbers<[1], [0], [0], [1], [0, 0, 1, 1], [], []>} : vector<8x64xbf16>, vector<64x2xbf16>, vector<8x2xf32> -> vector<8x2xf32>
    %c2 = arith.constant 2 : index
    %c0_17 = arith.constant 0 : index
    %24 = vector.load %arg4[%c2, %c0_17] : memref<3x128xf32, #tpu.memory_space<vmem>>, vector<1x2xf32>
    %25 = vector.broadcast %24 : vector<1x2xf32> to vector<8x2xf32>
    %26 = arith.addf %23, %25 : vector<8x2xf32>
    %c0_18 = arith.constant 0 : index
    %c0_19 = arith.constant 0 : index
    %27 = vector.load %arg7[%c0_18, %c0_19] : memref<8x2xf32, #tpu.memory_space<vmem>>, vector<8x2xf32>
    tpu.vector_store %arg7[%c0_18, %c0_19], %26 {strides = array<i32>} : memref<8x2xf32, #tpu.memory_space<vmem>>, vector<8x2xf32>,
    return
  }
  func.func @transform_0(%arg0: i32) -> (i32, i32) {
    %c0_i32 = arith.constant 0 : i32
    %c0_i32_0 = arith.constant 0 : i32
    return %arg0, %c0_i32 : i32, i32
  }
  func.func @transform_1(%arg0: i32) -> (i32, i32) {
    %c0_i32 = arith.constant 0 : i32
    %c0_i32_0 = arith.constant 0 : i32
    return %arg0, %c0_i32 : i32, i32
  }
  func.func @transform_2(%arg0: i32) -> (i32, i32) {
    %c0_i32 = arith.constant 0 : i32
    %c0_i32_0 = arith.constant 0 : i32
    %c0_i32_1 = arith.constant 0 : i32
    return %c0_i32, %c0_i32_0 : i32, i32
  }
  func.func @transform_3(%arg0: i32) -> (i32, i32) {
    %c0_i32 = arith.constant 0 : i32
    %c0_i32_0 = arith.constant 0 : i32
    %c0_i32_1 = arith.constant 0 : i32
    return %c0_i32, %c0_i32_0 : i32, i32
  }
  func.func @transform_4(%arg0: i32) -> (i32, i32) {
    %c0_i32 = arith.constant 0 : i32
    %c0_i32_0 = arith.constant 0 : i32
    %c0_i32_1 = arith.constant 0 : i32
    return %c0_i32, %c0_i32_0 : i32, i32
  }
  func.func @transform_5(%arg0: i32) -> (i32, i32) {
    %c0_i32 = arith.constant 0 : i32
    %c0_i32_0 = arith.constant 0 : i32
    %c0_i32_1 = arith.constant 0 : i32
    return %c0_i32, %c0_i32_0 : i32, i32
  }
  func.func @transform_6(%arg0: i32) -> (i32, i32) {
    %c0_i32 = arith.constant 0 : i32
    %c0_i32_0 = arith.constant 0 : i32
    return %arg0, %c0_i32 : i32, i32
  }
}

</mosaic_0001>

<bundles_post_ra>
// kernel: critic_fc_fused.1
= control target key start
LH: loop header
LB: loop body
LE: loop exit
PB: predicated region body
PF: predicated region fallthrough
CT: control target
= control target key end

     0   :  { %vm34_vm0 = vcmask 1043456   ;;  %v441_v0 = vmov 0.0   ;;  %vm442_vm1 = vmmov 0   ;;  %vm30_vm2 = vcmask 64512   ;;  %s566_s2 = inlined_call_operand.vmem [shape: bf16[32,128], index: 2, kind: input, shape index: {}]   ;;  %s567_s1 = inlined_call_operand.vmem [shape: bf16[8,8], index: 1, kind: input, shape index: {}]   ;;  %s568_s4 = inlined_call_operand.vmem [shape: bf16[128,64], index: 4, kind: input, shape index: {}]   ;;  %s569_s0 = inlined_call_operand.vmem [shape: bf16[8,24], index: 0, kind: input, shape index: {}]   ;;  %s570_s5 = inlined_call_operand.vmem [shape: bf16[64,2], index: 5, kind: input, shape index: {}]   ;;  %s571_s3 = inlined_call_operand.vmem [shape: f32[3,128], index: 3, kind: input, shape index: {}]   ;;  %s572_s6 = inlined_call_operand.vmem [shape: f32[8,2], index: 6, kind: output, shape index: {}]  }
   0x1   :  { %379 = vmatprep.subr.bf16.mxu1 %v441_v0  ;;  %v27_v1 = vld [vmem:[%s566_s2 + $0xc] sm:$0xf]  ;;  %381 = vmatprep.mubr.msk.bf16.mxu1 %vm442_vm1, %v441_v0  ;;  %v427_v3 = vld [vmem:[%s566_s2 + $0x8] ss:$0 sps:$4 sm:$0xff]   ;;  %v29_v4 = vld [vmem:[%s567_s1] sm:$0xf] }
   0x2   :  { %v36_v2 = vsel %vm34_vm0, %v27_v1, 0  ;;  %393 = vmatprep.subr.bf16.mxu0 %v441_v0  ;;  %409 = vmatprep.mubr.msk.bf16.mxu0 %vm442_vm1, %v441_v0  ;;  %v428_v5 = vld [vmem:[%s566_s2] sm:$0xff]   ;;  %v430_v7 = vld [vmem:[%s568_s4 + $0x8] sm:$0xff]   ;;  %v92_v8 = vsel %vm34_vm0, %v427_v3, 0  ;;  %v431_v9 = vld [vmem:[%s568_s4 + $0x10] sm:$0xff]   ;;  %vm87_vm3 = vcmask 195584  }
   0x3   :  { %380 = vmatpush3.bf16.msra.mxu1 %v36_v2  ;;  %v429_v6 = vld [vmem:[%s568_s4] sm:$0xff]   ;;  %v432_v11 = vld [vmem:[%s568_s4 + $0x18] sm:$0xff]   ;;  %v434_v13 = vld [vmem:[%s568_s4 + $0x28] sm:$0xff]   ;;  %vm290_vm4 = vcmask 523264   ;;  %vm334_vm5 = vcmask 15360  }
   0x4   :  { %385 = vmatprep.subr.bf16.mxu1 %v441_v0  ;;  %394 = vmatpush3.bf16.msra.mxu0 %v429_v6  ;;  %v28_v10 = vld [vmem:[%s569_s0] sm:$0xf]  ;;  %v435_v14 = vld [vmem:[%s568_s4 + $0x30] sm:$0xff]   ;;  %v436_v15 = vld [vmem:[%s568_s4 + $0x38] sm:$0xff]  }
   0x5   :  { %395 = vmatprep.subr.bf16.mxu0 %v441_v0  ;;  %v433_v12 = vld [vmem:[%s568_s4 + $0x20] sm:$0xff]   ;;  %v438_v17 = vld [vmem:[%s570_s5 + $0x8] sm:$0xff]   ;;  %v439_v31 = vld [vmem:[%s570_s5 + $0x10] sm:$0xff]  }
   0x6   :  { %382 = vmatmul.mubr.msk.bf16.vlgmr.msra.gmra.mrb[0].mxu1 %vm30_vm2, %v29_v4  ;;  %v437_v16 = vld [vmem:[%s570_s5] sm:$0xff]   ;;  %v440_v32 = vld [vmem:[%s570_s5 + $0x18] sm:$0xff]  }
   0x7   :  { %386 = vmatpush3.bf16.msra.mxu1 %v428_v5  ;;  %389 = vmatprep.mubr.msk.bf16.mxu1 %vm442_vm1, %v441_v0  ;;  %v344_v23 = vld [vmem:[%s571_s3] ss:$0 sm:$0xff]  ;;  %v345_v33 = vld [vmem:[%s571_s3 + $0x1] ss:$0 sm:$0xff]  ;;  %v354_v41 = vld [vmem:[%s571_s3 + $0x2] ss:$0 sm:$0xff] }
   0x8   :  { %387 = vmatprep.subr.bf16.mxu1 %v441_v0  ;;  %396 = vmatpush3.bf16.msra.mxu0 %v430_v7 }
   0x9   :  { %397 = vmatprep.subr.bf16.mxu0 %v441_v0 }
   0xb   :  { %388 = vmatpush3.bf16.msra.mxu1 %v92_v8 }
   0xc   :  { %413 = vmatprep.subr.bf16.mxu1 %v441_v0  ;;  %398 = vmatpush3.bf16.msra.mxu0 %v431_v9 }
   0xd   :  { %399 = vmatprep.subr.bf16.mxu0 %v441_v0 }
   0xe   :  { %390 = vmatmul.mubr.msk.bf16.vlgmr.msra.gmra.mrb[4].mxu1 %vm87_vm3, %v28_v10 }
   0xf   :  { %421 = vmatprep.mubr.msk.bf16.mxu1 %vm442_vm1, %v441_v0  ;;  %414 = vmatpush3.bf16.msra.mxu1 %v437_v16 }
  0x10   :  { %400 = vmatpush3.bf16.msra.mxu0 %v432_v11  ;;  %415 = vmatprep.subr.bf16.mxu1 %v441_v0 }
  0x11   :  { %401 = vmatprep.subr.bf16.mxu0 %v441_v0 }
  0x13   :  { %416 = vmatpush3.bf16.msra.mxu1 %v438_v17 }
  0x14   :  { %402 = vmatpush3.bf16.msra.mxu0 %v433_v12  ;;  %417 = vmatprep.subr.bf16.mxu1 %v441_v0 }
  0x15   :  { %403 = vmatprep.subr.bf16.mxu0 %v441_v0 }
  0x17   :  { %418 = vmatpush3.bf16.msra.mxu1 %v439_v31 }
  0x18   :  { %404 = vmatpush3.bf16.msra.mxu0 %v434_v13  ;;  %419 = vmatprep.subr.bf16.mxu1 %v441_v0 }
  0x19   :  { %405 = vmatprep.subr.bf16.mxu0 %v441_v0 }
  0x1b   :  { %420 = vmatpush3.bf16.msra.mxu1 %v440_v32 }
  0x1c   :  { %406 = vmatpush3.bf16.msra.mxu0 %v435_v14 }
  0x1d   :  { %407 = vmatprep.subr.bf16.mxu0 %v441_v0 }
  0x20   :  { %408 = vmatpush3.bf16.msra.mxu0 %v436_v15 }
  0xd9   :  { %v72_v18 = vpop.f32.mrb[0].mxu1 }
  0xda   :  { %v383_v19 = vpop.f32.mrb[1].mxu1 }
  0xdb   :  { %v75_v20 = vpop.f32.mrb[2].mxu1 }
  0xdc   :  { %v384_v21 = vpop.f32.mrb[3].mxu1 }
  0xe1   :  { %v128_v22 = vpop.f32.mrb[4].mxu1 }
  0xe2   :  { %v129_v24 = vadd.f32 %v128_v22, %v72_v18  ;;  %v391_v25 = vpop.f32.mrb[5].mxu1 }
  0xe3   :  { %v131_v26 = vpop.f32.mrb[6].mxu1 }
  0xe4   :  { %v139_v27 = vadd.f32 %v344_v23, %v129_v24  ;;  %v392_v28 = vpop.f32.mrb[7].mxu1 }
  0xe6   :  { %v140_v29 = vmax.f32 %v139_v27, 0.0 }
  0xe8   :  { %v141_v30 = vpack.c.bf16 %v140_v29, %v140_v29 }
  0xea   :  { %410 = vmatmul.mubr.bf16.vlgmr.msra.gmra.mrb[0].mxu0 %v141_v30 }
 0x1bd   :  { %v245_v34 = vpop.f32.mrb[0].mxu0 }
 0x1be   :  { %v246_v35 = vadd.f32 %v345_v33, %v245_v34  ;;  %v411_v36 = vpop.f32.mrb[1].mxu0 }
 0x1bf   :  { %v248_v37 = vpop.f32.mrb[2].mxu0 }
 0x1c0   :  { %v251_v38 = vmax.f32 %v246_v35, 0.0  ;;  %v412_v39 = vpop.f32.mrb[3].mxu0 }
 0x1c2   :  { %v252_v40 = vpack.c.bf16 %v251_v38, %v251_v38 }
 0x1c4   :  { %422 = vmatmul.mubr.msk.bf16.vlgmr.msra.gmra.mrb[8].mxu1 %vm290_vm4, %v252_v40 }
 0x297   :  { %v328_v42 = vpop.f32.mrb[8].mxu1 }
 0x298   :  { %v329_v43 = vadd.f32 %v354_v41, %v328_v42  ;;  %v423_v44 = vpop.f32.mrb[9].mxu1 }
 0x299   :  { %v331_v45 = vpop.f32.mrb[10].mxu1 }
 0x29a   :  { %335 = vst.msk [vmem:[%s572_s6] sm:$0xff] %vm334_vm5, %v329_v43  ;;  %v424_v46 = vpop.f32.mrb[11].mxu1 }

</bundles_post_ra>
